<compile_context>
chip_gen: v5e
topology: v5e:2x2
jax: 0.10.0
libtpu: 0.0.40
codegen_flags: <defaults>
</compile_context>

<pallas_src>
import functools
import math

import jax
import jax.numpy as jnp
import numpy as np
from jax.experimental import pallas as pl
from jax.experimental.pallas import tpu as pltpu


def _eca_kernel(x_ref, w_ref, o_ref, *, C, ksz, pad):
    """One grid step: TR = TB*C rows of the flattened (B*C, HW) activation.

    x_ref block: (TR, HW) in the activation's native dtype.
    w_ref: SMEM (ksz,) f32 conv1d weight.
    """
    x = x_ref[...]                                   # (TR, HW), lane-dense when HW%128==0
    TR = x.shape[0]

    # global average pool over spatial -> one f32 scalar per (batch, channel) row
    pooled = jnp.mean(x.astype(jnp.float32), axis=-1, keepdims=True)      # (TR, 1)

    # 1-D conv over the channel axis, zero padded, cross-correlation like torch:
    #   conv[c] = sum_k w[k] * pooled[c + k - pad]
    # Rows are ordered (batch-major, channel-minor), so channel index = row % C.
    # Sublane rolls bring neighbor rows; the (row % C) mask zeroes any tap that
    # would cross a batch boundary (or the grid-padding rows of a partial block),
    # which is exactly torch's zero padding.
    cidx = jax.lax.broadcasted_iota(jnp.int32, (TR, 1), 0) % C
    conv = jnp.zeros((TR, 1), jnp.float32)
    for k in range(ksz):                             # static unroll, ksz is tiny (3/5)
        off = k - pad                                # source row = c + off
        if off == 0:
            shifted = pooled
        else:
            shifted = pltpu.roll(pooled, shift=(-off) % TR, axis=0)
        valid = (cidx + off >= 0) & (cidx + off < C)
        conv = conv + w_ref[k] * jnp.where(valid, shifted, 0.0)
    # TODO(synk): for very large C (>=512) with small HW, do the conv lane-major
    # on a (TB, C) row to avoid C/8 nearly-empty vregs per temporary.

    # sigmoid gate (matches torch.sigmoid), broadcast over spatial
    scale = 1.0 / (1.0 + jnp.exp(-conv))             # (TR, 1) f32
    o_ref[...] = (x.astype(jnp.float32) * scale).astype(o_ref.dtype)


def ecanet_forward(x_nchw, w_conv, *, target_block_bytes=2 << 20):
    """ECANet forward.  x_nchw: (B, C, H, W) float (f32 or bf16), w_conv: (ksz,) f32."""
    B, C, H, W = x_nchw.shape
    HW = H * W
    ksz = int(w_conv.shape[0])
    pad = (ksz - 1) // 2
    itemsize = jnp.dtype(x_nchw.dtype).itemsize

    # ---- batch-coalescing tile selection (amortize per-grid-step overhead) ----
    per_batch_bytes = C * HW * itemsize
    TB = max(1, min(B, target_block_bytes // max(per_batch_bytes, 1)))
    if B >= 2:
        # keep at least 2 grid steps so both v7x TensorCores get work
        TB = min(TB, (B + 1) // 2)
    # last-two-dims rule: first block dim must be a multiple of 8 or the full dim
    while (TB * C) % 8 != 0 and TB < B:
        TB += 1
    if (TB * C) % 8 != 0:
        TB = B
    TR = TB * C
    steps = (B + TB - 1) // TB       # partial final block is masked by Pallas
    # TODO(synk): when B == 1 and a single (C, HW) block exceeds VMEM, add a
    # channel-tiled (+-pad halo) fallback so v7x still gets two parallel tiles.

    # ---- explicit VMEM budget: double-buffered in+out + f32 compute temps ----
    block_bytes = TR * HW * itemsize
    f32_tmp_bytes = 2 * TR * HW * 4                  # upcast copy + product temp
    vmem_need = 2 * 2 * block_bytes + f32_tmp_bytes + (2 << 20)
    try:
        vmem_cap = int(pltpu.get_tpu_info().vmem_capacity_bytes)
    except Exception:                                # conservative fallback (v7x)
        vmem_cap = 64 << 20
    vmem_limit = int(min(max(vmem_need, 32 << 20), int(vmem_cap * 0.875)))

    # free view: row-major NCHW, rows ordered (batch, channel)
    x2d = x_nchw.reshape(B * C, HW)
    # TODO(synk): when HW % 128 != 0 (e.g. 7x7/14x14 heads), present a lane-dense
    # flattened output slab instead of per-row masked stores (v5e single vst slot).
    out = pl.pallas_call(
        functools.partial(_eca_kernel, C=C, ksz=ksz, pad=pad),
        out_shape=jax.ShapeDtypeStruct((B * C, HW), x_nchw.dtype),
        grid=(steps,),
        in_specs=[
            pl.BlockSpec((TR, HW), lambda i: (i, 0)),
            pl.BlockSpec(memory_space=pltpu.MemorySpace.SMEM),   # (ksz,) conv weight
        ],
        out_specs=pl.BlockSpec((TR, HW), lambda i: (i, 0)),
        compiler_params=pltpu.CompilerParams(
            dimension_semantics=("parallel",),
            vmem_limit_bytes=vmem_limit,
        ),
    )(x2d, w_conv)
    return out.reshape(B, C, H, W)


def eca_kernel_size(in_channels, gamma=2, b=1):
    k = int(abs((math.log(in_channels, 2) + b) / gamma))
    return k if k % 2 else k + 1


def reference_forward(x_nchw, w_conv):
    """Pure-JAX f32 reference mirroring the PyTorch module (pad+slice path)."""
    B, C, H, W = x_nchw.shape
    ksz = w_conv.shape[0]
    pad = (ksz - 1) // 2
    x32 = x_nchw.astype(jnp.float32)
    pooled = jnp.mean(x32, axis=(2, 3))                          # (B, C)
    pz = jnp.pad(pooled, ((0, 0), (pad, pad)))
    conv = sum(w_conv[k] * pz[:, k:k + C] for k in range(ksz))   # (B, C)
    scale = jax.nn.sigmoid(conv)
    return x32 * scale[:, :, None, None]


if __name__ == "__main__":
    # ECANet(in_channels=32, out_channels=32) -> conv1d kernel_size = 3
    B, C, H, W = 4, 32, 16, 16
    ksz = eca_kernel_size(C)

    key = jax.random.PRNGKey(0)
    kx, kw = jax.random.split(key)
    x = jax.random.normal(kx, (B, C, H, W), dtype=jnp.float32)
    w_conv = (0.3 * jax.random.normal(kw, (ksz,))).astype(jnp.float32)

    # f32 path, batch-coalesced grid (TB=2, 2 grid steps)
    out = jax.block_until_ready(ecanet_forward(x, w_conv))
    assert out.shape == x.shape and out.dtype == jnp.float32
    ref = jax.block_until_ready(reference_forward(x, w_conv))
    np.testing.assert_allclose(np.asarray(out), np.asarray(ref), rtol=1e-5, atol=1e-6)

    # bf16 I/O path (halves HBM traffic) + partial final grid block (B=3, TB=2)
    xb = jax.random.normal(kx, (3, C, H, W), dtype=jnp.float32)
    out_bf = jax.block_until_ready(ecanet_forward(xb.astype(jnp.bfloat16), w_conv))
    assert out_bf.dtype == jnp.bfloat16
    ref_bf = reference_forward(xb.astype(jnp.bfloat16), w_conv)
    np.testing.assert_allclose(np.asarray(out_bf).astype(np.float32),
                               np.asarray(ref_bf), rtol=2e-2, atol=2e-2)

    print("KERNEL_OK")
</pallas_src>

<mosaic_0001>
module attributes {stable_mosaic.version = 11 : i64} {
  func.func @_eca_kernel(%arg0: i32, %arg1: memref<64x256xf32, #tpu.memory_space<vmem>>, %arg2: memref<3xf32, #tpu.memory_space<smem>>, %arg3: memref<64x256xf32, #tpu.memory_space<vmem>>) attributes {dimension_semantics = [#tpu.dimension_semantics<parallel>], iteration_bounds = array<i64: 2>, scalar_prefetch = 0 : i64, scratch_operands = 0 : i64, tpu.core_type = #tpu.core_type<tc>, window_params = [{transform_indices = @transform_0, window_bounds = array<i64: 64, 256>}, {transform_indices = @transform_1, window_bounds = array<i64: 3>}, {transform_indices = @transform_2, window_bounds = array<i64: 64, 256>}]} {
    %c0 = arith.constant 0 : index
    %c0_0 = arith.constant 0 : index
    %0 = vector.load %arg1[%c0, %c0_0] : memref<64x256xf32, #tpu.memory_space<vmem>>, vector<64x256xf32>
    %cst = arith.constant dense<0.000000e+00> : vector<64xf32>
    %1 = vector.multi_reduction <add>, %0, %cst [1] : vector<64x256xf32> to vector<64xf32>
    %2 = vector.shape_cast %1 : vector<64xf32> to vector<64x1xf32>
    %cst_1 = arith.constant 2.560000e+02 : f32
    %3 = vector.broadcast %cst_1 : f32 to vector<64x1xf32>
    %4 = arith.divf %2, %3 : vector<64x1xf32>
    %5 = tpu.iota {dimensions = array<i32: 0>} : vector<64x1xi32>
    %c32_i32 = arith.constant 32 : i32
    %c0_i32 = arith.constant 0 : i32
    %6 = arith.cmpi eq, %c32_i32, %c0_i32 : i32
    %c1_i32 = arith.constant 1 : i32
    %7 = arith.select %6, %c1_i32, %c32_i32 : i32
    %8 = vector.broadcast %7 : i32 to vector<64x1xi32>
    %9 = arith.remsi %5, %8 : vector<64x1xi32>
    %c0_i32_2 = arith.constant 0 : i32
    %10 = vector.broadcast %c0_i32_2 : i32 to vector<64x1xi32>
    %11 = arith.cmpi ne, %9, %10 : vector<64x1xi32>
    %c0_i32_3 = arith.constant 0 : i32
    %12 = vector.broadcast %c0_i32_3 : i32 to vector<64x1xi32>
    %13 = arith.cmpi slt, %9, %12 : vector<64x1xi32>
    %c0_i32_4 = arith.constant 0 : i32
    %14 = arith.cmpi slt, %7, %c0_i32_4 : i32
    %15 = vector.broadcast %14 : i1 to vector<64x1xi1>
    %16 = vector.broadcast %15 : vector<64x1xi1> to vector<64x1xi1>
    %17 = arith.xori %13, %16 : vector<64x1xi1>
    %18 = arith.andi %17, %11 : vector<64x1xi1>
    %19 = vector.broadcast %7 : i32 to vector<64x1xi32>
    %20 = arith.addi %9, %19 : vector<64x1xi32>
    %21 = arith.select %18, %20, %9 : vector<64x1xi1>, vector<64x1xi32>
    %cst_5 = arith.constant 0.000000e+00 : f32
    %22 = vector.broadcast %cst_5 : f32 to vector<64x1xf32>
    %c1_i32_6 = arith.constant 1 : i32
    %23 = tpu.dynamic_rotate %4 by %c1_i32_6 dim 0 : vector<64x1xf32>, i32 -> vector<64x1xf32>
    %c-1_i32 = arith.constant -1 : i32
    %24 = vector.broadcast %c-1_i32 : i32 to vector<64x1xi32>
    %25 = arith.addi %21, %24 : vector<64x1xi32>
    %c0_i32_7 = arith.constant 0 : i32
    %26 = vector.broadcast %c0_i32_7 : i32 to vector<64x1xi32>
    %27 = arith.cmpi sge, %25, %26 : vector<64x1xi32>
    %c-1_i32_8 = arith.constant -1 : i32
    %28 = vector.broadcast %c-1_i32_8 : i32 to vector<64x1xi32>
    %29 = arith.addi %21, %28 : vector<64x1xi32>
    %c32_i32_9 = arith.constant 32 : i32
    %30 = vector.broadcast %c32_i32_9 : i32 to vector<64x1xi32>
    %31 = arith.cmpi slt, %29, %30 : vector<64x1xi32>
    %32 = arith.andi %27, %31 : vector<64x1xi1>
    %c0_10 = arith.constant 0 : index
    %33 = memref.load %arg2[%c0_10] : memref<3xf32, #tpu.memory_space<smem>>
    %cst_11 = arith.constant 0.000000e+00 : f32
    %34 = vector.broadcast %cst_11 : f32 to vector<64x1xf32>
    %35 = arith.select %32, %23, %34 : vector<64x1xi1>, vector<64x1xf32>
    %36 = vector.broadcast %33 : f32 to vector<64x1xf32>
    %37 = arith.mulf %36, %35 : vector<64x1xf32>
    %38 = arith.addf %22, %37 : vector<64x1xf32>
    %c0_i32_12 = arith.constant 0 : i32
    %39 = vector.broadcast %c0_i32_12 : i32 to vector<64x1xi32>
    %40 = arith.addi %21, %39 : vector<64x1xi32>
    %c0_i32_13 = arith.constant 0 : i32
    %41 = vector.broadcast %c0_i32_13 : i32 to vector<64x1xi32>
    %42 = arith.cmpi sge, %40, %41 : vector<64x1xi32>
    %c0_i32_14 = arith.constant 0 : i32
    %43 = vector.broadcast %c0_i32_14 : i32 to vector<64x1xi32>
    %44 = arith.addi %21, %43 : vector<64x1xi32>
    %c32_i32_15 = arith.constant 32 : i32
    %45 = vector.broadcast %c32_i32_15 : i32 to vector<64x1xi32>
    %46 = arith.cmpi slt, %44, %45 : vector<64x1xi32>
    %47 = arith.andi %42, %46 : vector<64x1xi1>
    %c1 = arith.constant 1 : index
    %48 = memref.load %arg2[%c1] : memref<3xf32, #tpu.memory_space<smem>>
    %cst_16 = arith.constant 0.000000e+00 : f32
    %49 = vector.broadcast %cst_16 : f32 to vector<64x1xf32>
    %50 = arith.select %47, %4, %49 : vector<64x1xi1>, vector<64x1xf32>
    %51 = vector.broadcast %48 : f32 to vector<64x1xf32>
    %52 = arith.mulf %51, %50 : vector<64x1xf32>
    %53 = arith.addf %38, %52 : vector<64x1xf32>
    %c63_i32 = arith.constant 63 : i32
    %54 = tpu.dynamic_rotate %4 by %c63_i32 dim 0 : vector<64x1xf32>, i32 -> vector<64x1xf32>
    %c1_i32_17 = arith.constant 1 : i32
    %55 = vector.broadcast %c1_i32_17 : i32 to vector<64x1xi32>
    %56 = arith.addi %21, %55 : vector<64x1xi32>
    %c0_i32_18 = arith.constant 0 : i32
    %57 = vector.broadcast %c0_i32_18 : i32 to vector<64x1xi32>
    %58 = arith.cmpi sge, %56, %57 : vector<64x1xi32>
    %c1_i32_19 = arith.constant 1 : i32
    %59 = vector.broadcast %c1_i32_19 : i32 to vector<64x1xi32>
    %60 = arith.addi %21, %59 : vector<64x1xi32>
    %c32_i32_20 = arith.constant 32 : i32
    %61 = vector.broadcast %c32_i32_20 : i32 to vector<64x1xi32>
    %62 = arith.cmpi slt, %60, %61 : vector<64x1xi32>
    %63 = arith.andi %58, %62 : vector<64x1xi1>
    %c2 = arith.constant 2 : index
    %64 = memref.load %arg2[%c2] : memref<3xf32, #tpu.memory_space<smem>>
    %cst_21 = arith.constant 0.000000e+00 : f32
    %65 = vector.broadcast %cst_21 : f32 to vector<64x1xf32>
    %66 = arith.select %63, %54, %65 : vector<64x1xi1>, vector<64x1xf32>
    %67 = vector.broadcast %64 : f32 to vector<64x1xf32>
    %68 = arith.mulf %67, %66 : vector<64x1xf32>
    %69 = arith.addf %53, %68 : vector<64x1xf32>
    %cst_22 = arith.constant 0.000000e+00 : f32
    %70 = vector.broadcast %cst_22 : f32 to vector<64x1xf32>
    %71 = arith.subf %70, %69 : vector<64x1xf32>
    %72 = math.exp %71 : vector<64x1xf32>
    %cst_23 = arith.constant 1.000000e+00 : f32
    %73 = vector.broadcast %cst_23 : f32 to vector<64x1xf32>
    %74 = arith.addf %73, %72 : vector<64x1xf32>
    %cst_24 = arith.constant 1.000000e+00 : f32
    %75 = vector.broadcast %cst_24 : f32 to vector<64x1xf32>
    %76 = arith.divf %75, %74 : vector<64x1xf32>
    %77 = vector.broadcast %76 : vector<64x1xf32> to vector<64x256xf32>
    %78 = arith.mulf %0, %77 : vector<64x256xf32>
    %c0_25 = arith.constant 0 : index
    %c0_26 = arith.constant 0 : index
    %79 = vector.load %arg3[%c0_25, %c0_26] : memref<64x256xf32, #tpu.memory_space<vmem>>, vector<64x256xf32>
    tpu.vector_store %arg3[%c0_25, %c0_26], %78 {strides = array<i32>} : memref<64x256xf32, #tpu.memory_space<vmem>>, vector<64x256xf32>,
    return
  }
  func.func @transform_0(%arg0: i32) -> (i32, i32) {
    %c0_i32 = arith.constant 0 : i32
    %c0_i32_0 = arith.constant 0 : i32
    return %arg0, %c0_i32 : i32, i32
  }
  func.func @transform_1(%arg0: i32) -> i32 {
    %c0_i32 = arith.constant 0 : i32
    %c0_i32_0 = arith.constant 0 : i32
    return %c0_i32 : i32
  }
  func.func @transform_2(%arg0: i32) -> (i32, i32) {
    %c0_i32 = arith.constant 0 : i32
    %c0_i32_0 = arith.constant 0 : i32
    return %arg0, %c0_i32 : i32, i32
  }
}

</mosaic_0001>

<bundles_post_ra>
// kernel: tpu_custom_call.1
= control target key start
LH: loop header
LB: loop body
LE: loop exit
PB: predicated region body
PF: predicated region fallthrough
CT: control target
= control target key end

     0   :  { %7 = vsyncpa [#allocation3], 0  ;;  %s1541_s0 = inlined_call_operand.hbm [shape: f32[128,256], index: 0, kind: input, shape index: {}]   ;;  %s1542_s1 = inlined_call_operand.hbm [shape: f32[3], index: 1, kind: input, shape index: {}]   ;;  %s1543_s2 = inlined_call_operand.hbm [shape: f32[128,256], index: 2, kind: output, shape index: {}]  }
   0x1   :  { %9 = vsyncpa [#allocation3 + $0x1], 0 }
   0x2   :  { %10 = vsyncpa [#allocation5], 0 }
   0x3   :  { %11 = vsyncpa [#allocation4], 0 }
   0x4   :  { %13 = vsyncpa [#allocation4 + $0x1], 0  ;;  %s1130_s9 = smov 0   ;;  %s1132_s10 = smov 0  }
   0x5   :  { %s1134_s11 = smov 0   ;;  %s1136_s12 = smov 0  }
   0x6 LB: > { %s1151_s13 = sadd.s32 4294967295, %s1106_s12   ;;  %s867_s14 = sadd.s32 4294967294, %s1106_s12   ;;  %s1106_s12 = sphi %s1136_s12, %s1556_s12   ;;  %s1102_s11 = sphi %s1134_s11, %s1555_s11   ;;  %s1098_s10 = sphi %s1132_s10, %s1554_s10   ;;  %s1094_s9 = sphi %s1130_s9, %s1553_s9  }
   0x7   : > { %s1155_s15 = sadd.s32 1, %s1106_s12   ;;  %s26_s16 = sadd.s32 1, %s1102_s11 }
   0x8   : > { %s23_s17 = ssub.s32 %s1106_s12, %s1155_s15  ;;  %p33_p0 = scmp.ne.s32.totalorder %s1102_s11, %s1098_s10 }
   0x9   : > { %p24_p1 = scmp.eq.s32.totalorder %s23_s17, 0  ;;  %p34_p2 = scmp.eq.s32.totalorder %s1106_s12, 0 }
   0xa   : > { %p39_p3 = scmp.ne.s32.totalorder %s1098_s10, %s1094_s9  ;;  %p40_p4 = scmp.eq.s32.totalorder %s1151_s13, 0 }
   0xb   : > { %s1167_s18 = scalar_select %p24_p1, %s1102_s11, %s26_s16  }
   0xc   : > { %p1169_p5 = por %p34_p2, %p33_p0  ;;  %p1175_p6 = por %p40_p4, %p39_p3 }
   0xd   : > { %p84_p7 = scmp.eq.s32.totalorder %s1151_s13, 1  ;;  %p90_p8 = scmp.eq.s32.totalorder %s867_s14, 1 }
   0xe   : > { %p868_p9 = scmp.ge.s32.totalorder %s1106_s12, 1  ;;  %p97_p10 = scmp.lt.s32.totalorder %s1106_s12, 3 }
   0xf   : > { %p1182_p11 = por %p84_p7, %p33_p0  ;;  %p1186_p12 = por %p90_p8, %p39_p3 }
  0x10   : > { %p1190_p13 = pnand %p868_p9, %p97_p10  ;;  %s109_s26 = sshll.u32 %s1542_s1, 4  ;;  %s110_s26 = int_to_ptr.hbm [resolvable:$true] %s109_s26 }
  0x11   : > { %p912_p2 = scmp.lt.s32.totalorder %s1106_s12, 2  ;;  %s120_s27 = sand.u32 1, %s1102_s11  }
  0x12   : > { %p899_p1 = pneg %p1190_p13  ;;  %s871_s29 = sshll.u32 %s120_s27, 7 }
  0x13   : > { %p1206_p3 = pnand %p912_p2, %p1169_p5  ;;  %s1108_s30 = smov [#allocation6]  }
  0x14   : > { %p900_p7 = pnand %p899_p1, %p40_p4  ;;  %s888_s3 = sshll.u32 %s1106_s12, 7 }
  0x15   : > { %s124_s4 = scalar_lea.vmem [#allocation2], %s871_s29  ;;  %s130_s8 = scalar_lea.hbm %s1541_s0, %s888_s3 }
  0x16   : > { %902 = dma.hbm_to_smem (!%p900_p7), %s110_s26, 16, %s1108_s30, [#allocation5]  }
  0x17   : > { %s133_s5 = sshll.u32 %s124_s4, 4  ;;  %s131_s14 = sshll.u32 %s130_s8, 4  ;;  %s134_s5 = int_to_ptr.vmem [resolvable:$true] %s133_s5  ;;  %s132_s14 = int_to_ptr.hbm [resolvable:$true] %s131_s14 }
  0x18   : > { %s121_s16 = scalar_lea.sflag [#allocation3], %s120_s27  ;;  %s1006_s17 = sshra.s32 %s132_s14, 4  ;;  %s1007_s17 = int_to_ptr.hbm [resolvable:$true] %s1006_s17 }
  0x19   : > { %s1008_s19 = scalar_lea.hbm %s1007_s17, 128  ;;  %p1010_p8 = pneg %p1206_p3 }
  0x1a   : > { %p1009_p5 = scmp.ne.s32.totalorder %s1007_s17, %s1008_s19  ;;  %s1013_s26 = scalar_lea.hbm %s1541_s0, 256 }
  0x1b   : > { %p1014_p1 = scmp.lt.s32.totalorder %s1007_s17, %s1541_s0  ;;  %p1015_p2 = scmp.lt.s32.totalorder %s1013_s26, %s1008_s19 }
  0x1c   : > { %p1011_p9 = pnand %p1010_p8, %p1009_p5 }
  0x1d   : > { %p1016_p7 = por %p1015_p2, %p1014_p1 }
  0x1e   : > { %p1012_p10 = pneg %p1011_p9 }
  0x20   : > { %p1017_p0 = pnand %p1016_p7, %p1012_p10 }
  0x22   : > { %1020 = shalt.err (!%p1017_p0)
}
  0x23   : > { %s1109_s27 = smov 256   ;;  %s1110_s3 = smov 16  }
  0x24   : > { %906 = dma.hbm_to_vmem [thread:$0]  (!%p1206_p3), %s132_s14, 2048, %s134_s5, %s121_s16, %s1109_s27, %s1109_s27, %s1110_s3  }
  0x25   : > { %145 = sbr.rel (%p1190_p13) target bundleno = 360 (0x168), region = 28  ;;  %s1227_s4 = sand.u32 (!%p1190_p13), 1, %s1098_s10  }
  0x26   : > { %s876_s6 = sshll.u32 (!%p1190_p13), %s1227_s4, 7  ;;  %s148_s7 = scalar_lea.sflag (!%p1190_p13), [#allocation3], %s1227_s4 }
  0x27   : > { %s1233_s8 = scalar_lea.vmem (!%p1190_p13), [#allocation2], %s876_s6 }
  0x2a   : > { %1081 = dma.done.wait (%p1175_p6), %s148_s7, 2048  }
  0x2b   : > { %1083 = vsyncadd (%p1175_p6), %s148_s7, 4294965248 }
  0x2c   : > { %1085 = dma.done.wait (%p40_p4), [#allocation5], 16  }
  0x2d   : > { %1087 = vsyncadd (%p40_p4), [#allocation5], 4294967280 }
  0x2e   : > { %162 = sfence }
  0x2f   : > { %v1244_v0 = vld [vmem:[%s1233_s8 + $0x40] sm:$0xff]  ;;  %v1247_v1 = vld [vmem:[%s1233_s8 + $0x48] sm:$0xff]  ;;  %v1250_v2 = vld [vmem:[%s1233_s8 + $0x10] sm:$0xff]  ;;  %v1111_v24 = vmov 256.0   ;;  %v236_v28 = vlaneseq  ;;  %s390_s20 = sld [smem:[#allocation6]]  ;;  %s1475_s5 = scalar_lea.vmem [#allocation7], %s876_s6 }
  0x30   : > { %v209_v3 = vadd.f32 %v1247_v1, %v1244_v0  ;;  %v1255_v4 = vld [vmem:[%s1233_s8 + $0x18] sm:$0xff]  ;;  %v1258_v5 = vld [vmem:[%s1233_s8] sm:$0xff]  ;;  %v1261_v6 = vld [vmem:[%s1233_s8 + $0x8] sm:$0xff]  ;;  %957 = vrcp.f32 %v1111_v24  ;;  %s879_s23 = sld [smem:[#allocation6 + $0x1]]  ;;  %s890_s14 = sshll.u32 %s1151_s13, 7 }
  0x31   : > { %v200_v7 = vadd.f32 %v1255_v4, %v1250_v2  ;;  %v197_v8 = vadd.f32 %v1261_v6, %v1258_v5  ;;  %v1268_v9 = vld [vmem:[%s1233_s8 + $0x70] sm:$0xff]  ;;  %v1271_v10 = vld [vmem:[%s1233_s8 + $0x78] sm:$0xff]  ;;  %v1274_v11 = vld [vmem:[%s1233_s8 + $0x20] sm:$0xff]  ;;  %v1307_v30 = vshrl.u32 %v236_v28, 7  ;;  %s880_s28 = sld [smem:[#allocation6 + $0x2]]  ;;  %s778_s19 = scalar_lea.hbm %s1543_s2, %s890_s14 }
  0x32   : > { %210 = vadd.xlane.f32.xlu1 %v209_v3  ;;  %v1277_v12 = vld [vmem:[%s1233_s8 + $0x28] sm:$0xff]  ;;  %v1280_v13 = vld [vmem:[%s1233_s8 + $0x30] sm:$0xff]  ;;  %v1283_v14 = vld [vmem:[%s1233_s8 + $0x38] sm:$0xff]  ;;  %v218_v15 = vadd.f32 %v1271_v10, %v1268_v9  ;;  %s779_s24 = sshll.u32 %s1475_s5, 4  ;;  %s781_s25 = sshll.u32 %s778_s19, 4  ;;  %s780_s24 = int_to_ptr.vmem [resolvable:$true] %s779_s24  ;;  %s782_s25 = int_to_ptr.hbm [resolvable:$true] %s781_s25 }
  0x33   : > { %201 = vadd.xlane.f32.xlu2 %v200_v7  ;;  %198 = vadd.xlane.f32.xlu0 %v197_v8  ;;  %v203_v16 = vadd.f32 %v1277_v12, %v1274_v11  ;;  %v206_v17 = vadd.f32 %v1283_v14, %v1280_v13  ;;  %v1292_v18 = vld [vmem:[%s1233_s8 + $0x60] sm:$0xff]  ;;  %v1295_v19 = vld [vmem:[%s1233_s8 + $0x68] sm:$0xff]  ;;  %v1298_v20 = vld [vmem:[%s1233_s8 + $0x50] sm:$0xff]  ;;  %v244_v32 = vadd.s32 56, %v1307_v30  ;;  %v240_v33 = vadd.s32 24, %v1307_v30  ;;  %s766_s13 = scalar_lea.sflag [#allocation4], %s1227_s4 }
  0x34   : > { %v1301_v21 = vld [vmem:[%s1233_s8 + $0x58] sm:$0xff]  ;;  %v215_v22 = vadd.f32 %v1295_v19, %v1292_v18  ;;  %v241_v34 = vadd.s32 32, %v1307_v30  ;;  %v249_v36 = vand.u32 31, %v1307_v30  ;;  %vm349_vm1 = vcmp.lt.s32.totalorder %v1307_v30, 1  ;;  %s1050_s26 = sshra.s32 %s782_s25, 4  ;;  %s1056_s3 = scalar_lea.hbm %s1543_s2, 256  ;;  %s1051_s26 = int_to_ptr.hbm [resolvable:$true] %s1050_s26 }
  0x35   : > { %v212_v23 = vadd.f32 %v1301_v21, %v1298_v20  ;;  %v298_v38 = vand.u32 31, %v244_v32  ;;  %v270_v39 = vand.u32 31, %v240_v33  ;;  %v1321_v54 = vstv %s390_s20  ;;  %s1052_s29 = scalar_lea.hbm %s1051_s26, 128  ;;  %p1057_p0 = scmp.lt.s32.totalorder %s1051_s26, %s1543_s2 }
  0x36   : > { %v958_v25 = vpop.eup %957  ;;  %v277_v42 = vand.u32 31, %v241_v34  ;;  %v358_v45 = vadd.s32 4294967295, %v249_v36  ;;  %vm474_vm2 = vcmp.lt.s32.totalorder %v1307_v30, 7  ;;  %v1326_v56 = vstv %s879_s23  ;;  %p1053_p4 = scmp.ne.s32.totalorder %s1051_s26, %s1052_s29  ;;  %p1058_p3 = scmp.lt.s32.totalorder %s1056_s3, %s1052_s29 }
  0x37   : > { %v222_v26 = vmul.f32 256.0, %v958_v25  ;;  %vm226_vm0 = vweird.f32 %v958_v25  ;;  %v490_v48 = vadd.s32 1, %v298_v38  ;;  %v486_v49 = vadd.s32 1, %v270_v39 }
  0x38   : > { %v362_v53 = vadd.s32 4294967295, %v277_v42  ;;  %v1328_v57 = vstv %s880_s28  ;;  %vm366_vm3 = vcmp.ge.s32.totalorder %v358_v45, 0  ;;  %p1054_p6 = pnand %p1053_p4, %p1182_p11  ;;  %p1059_p5 = por %p1058_p3, %p1057_p0 }
  0x39   : > { %v223_v27 = vsub.f32 1.0, %v222_v26  ;;  %vm506_vm4 = vcmp.lt.s32.totalorder %v490_v48, 32  ;;  %vm502_vm5 = vcmp.lt.s32.totalorder %v486_v49, 32 }
  0x3a   : > { %219 = vadd.xlane.f32.xlu1 %v218_v15  ;;  %vm370_vm6 = vcmp.ge.s32.totalorder %v362_v53, 0  ;;  %p1055_p13 = pneg %p1054_p6 }
  0x3b   : > { %204 = vadd.xlane.f32.xlu2 %v203_v16  ;;  %207 = vadd.xlane.f32.xlu0 %v206_v17  ;;  %v224_v29 = vmul.f32 %v958_v25, %v223_v27 }
  0x3c   : > { %p1060_p8 = pnand %p1059_p5, %p1055_p13 }
  0x3d   : > { %v225_v31 = vadd.f32 %v958_v25, %v224_v29 }
  0x3f   : > { %v1312_v35 = vsel %vm226_vm0, %v958_v25, %v225_v31 }
  0x42   : > { %216 = vadd.xlane.f32.xlu1 %v215_v22 }
  0x43   : > { %213 = vadd.xlane.f32.xlu0 %v212_v23 }
  0xa5   : > { %v211_v37 = vpop.xlane.xlu1 %210 }
  0xa6   : > { %v202_v40 = vpop.xlane.xlu2 %201  ;;  %v199_v41 = vpop.xlane.xlu0 %198  ;;  %v1319_v50 = vmul.f32 %v1312_v35, %v211_v37 }
  0xa7   : > { %v229_v43 = vmul.f32 %v1312_v35, %v202_v40  ;;  %v228_v44 = vmul.f32 %v1312_v35, %v199_v41 }
  0xa8   : > { %v345_v59 = vrot.slane %v1319_v50, 7  ;;  %v1339_v7 = vmul.f32 %v1326_v56, %v1319_v50  ;;  %v470_v8 = vrot.slane %v1319_v50, 1 }
  0xa9   : > { %v342_v46 = vrot.slane %v229_v43, 7  ;;  %v341_v47 = vrot.slane %v228_v44, 7  ;;  %v467_v51 = vrot.slane %v229_v43, 1  ;;  %v466_v52 = vrot.slane %v228_v44, 1 }
  0xaa   : > { %v451_v17 = vmul.f32 %v1326_v56, %v229_v43  ;;  %v450_v22 = vmul.f32 %v1326_v56, %v228_v44 }
  0xab   : > { %v356_v55 = vsel %vm349_vm1, %v341_v47, %v342_v46  ;;  %v481_v61 = vsel %vm474_vm2, %v466_v52, %v467_v51 }
  0xac   : > { %v401_v60 = vmul.f32 %v1321_v54, %v356_v55  ;;  %v525_v25 = vmul.f32 %v1328_v57, %v481_v61 }
  0xad   : > { %v220_v58 = vpop.xlane.xlu1 %219 }
  0xae   : > { %v1335_v62 = vmul.f32 %v1312_v35, %v220_v58  ;;  %v205_v63 = vpop.xlane.xlu2 %204  ;;  %v208_v3 = vpop.xlane.xlu0 %207  ;;  %v459_v29 = vadd.f32 %v451_v17, %v401_v60 }
  0xaf   : > { %v230_v15 = vmul.f32 %v1312_v35, %v205_v63  ;;  %v231_v16 = vmul.f32 %v1312_v35, %v208_v3 }
  0xb0   : > { %v348_v23 = vrot.slane %v1335_v62, 7  ;;  %v473_v24 = vrot.slane %v1335_v62, 1  ;;  %v457_v32 = vmul.f32 %v1326_v56, %v1335_v62 }
  0xb1   : > { %v343_v26 = vrot.slane %v230_v15, 7  ;;  %v468_v27 = vrot.slane %v230_v15, 1  ;;  %v344_v28 = vrot.slane %v231_v16, 7  ;;  %v469_v33 = vrot.slane %v231_v16, 1 }
  0xb2   : > { %v357_v31 = vsel %vm349_vm1, %v348_v23, %v341_v47  ;;  %v452_v37 = vmul.f32 %v1326_v56, %v230_v15  ;;  %v482_v40 = vsel %vm474_vm2, %v473_v24, %v466_v52  ;;  %v453_v44 = vmul.f32 %v1326_v56, %v231_v16 }
  0xb3   : > { %v391_v34 = vsel %vm366_vm3, %v357_v31, 0.0  ;;  %v355_v36 = vsel %vm349_vm1, %v342_v46, %v343_v26  ;;  %v480_v38 = vsel %vm474_vm2, %v467_v51, %v468_v27  ;;  %v354_v43 = vsel %vm349_vm1, %v343_v26, %v344_v28 }
  0xb4   : > { %v400_v39 = vmul.f32 %v1321_v54, %v391_v34  ;;  %v402_v41 = vmul.f32 %v1321_v54, %v355_v36  ;;  %v526_v42 = vmul.f32 %v1328_v57, %v480_v38  ;;  %v478_v45 = vsel %vm474_vm2, %v469_v33, %v470_v8 }
  0xb5   : > { %v479_v46 = vsel %vm474_vm2, %v468_v27, %v469_v33  ;;  %v217_v47 = vpop.xlane.xlu1 %216  ;;  %v353_v58 = vsel %vm349_vm1, %v344_v28, %v345_v59  ;;  %v523_v61 = vsel %vm506_vm4, %v482_v40, 0.0  ;;  %v403_v62 = vmul.f32 %v1321_v54, %v354_v43 }
  0xb6   : > { %v458_v51 = vadd.f32 %v450_v22, %v400_v39  ;;  %v460_v52 = vadd.f32 %v452_v37, %v402_v41  ;;  %v534_v55 = vadd.f32 %v526_v42, %v459_v29  ;;  %v214_v60 = vpop.xlane.xlu0 %213  ;;  %v519_v63 = vsel %vm502_vm5, %v478_v45, 0.0 }
  0xb7   : > { %v527_v3 = vmul.f32 %v1328_v57, %v479_v46  ;;  %v528_v17 = vmul.f32 %v1328_v57, %v519_v63  ;;  %v234_v22 = vmul.f32 %v1312_v35, %v217_v47  ;;  %v395_v26 = vsel %vm370_vm6, %v353_v58, 0.0 }
  0xb8   : > { %v533_v15 = vadd.f32 %v525_v25, %v458_v51  ;;  %v542_v16 = vsub.f32 0.0, %v534_v55  ;;  %v461_v27 = vadd.f32 %v453_v44, %v403_v62  ;;  %v233_v28 = vmul.f32 %v1312_v35, %v214_v60 }
  0xb9   : > { %v535_v29 = vadd.f32 %v527_v3, %v460_v52  ;;  %v532_v48 = vmul.f32 %v1328_v57, %v523_v61  ;;  %v347_v49 = vrot.slane %v234_v22, 7  ;;  %v472_v37 = vrot.slane %v234_v22, 1 }
  0xba   : > { %v541_v31 = vsub.f32 0.0, %v533_v15  ;;  %v551_v33 = vmul.f32 1.442695, %v542_v16  ;;  %v536_v34 = vadd.f32 %v528_v17, %v461_v27  ;;  %v346_v25 = vrot.slane %v233_v28, 7 }
  0xbb   : > { %v543_v36 = vsub.f32 0.0, %v535_v29  ;;  %v404_v39 = vmul.f32 %v1321_v54, %v395_v26  ;;  %v350_v53 = vsel %vm349_vm1, %v347_v49, %v348_v23  ;;  %v456_v42 = vmul.f32 %v1326_v56, %v234_v22 }
  0xbc   : > { %v549_v38 = vmul.f32 1.442695, %v541_v31  ;;  %959 = vpow2.f32 %v551_v33  ;;  %v544_v40 = vsub.f32 0.0, %v536_v34  ;;  %v407_v35 = vmul.f32 %v1321_v54, %v350_v53 }
  0xbd   : > { %v553_v41 = vmul.f32 1.442695, %v543_v36  ;;  %v475_v43 = vsel %vm474_vm2, %v472_v37, %v473_v24  ;;  %v351_v44 = vsel %vm349_vm1, %v346_v25, %v347_v49  ;;  %v352_v45 = vsel %vm349_vm1, %v345_v59, %v346_v25 }
  0xbe   : > { %v455_v46 = vmul.f32 %v1326_v56, %v233_v28  ;;  %v555_v23 = vmul.f32 1.442695, %v544_v40  ;;  %v465_v47 = vadd.f32 %v457_v32, %v407_v35  ;;  %v405_v51 = vmul.f32 %v1321_v54, %v352_v45 }
  0xbf   : > { %961 = vpow2.f32 %v553_v41  ;;  %v406_v52 = vmul.f32 %v1321_v54, %v351_v44  ;;  %v471_v55 = vrot.slane %v233_v28, 1  ;;  %v462_v24 = vadd.f32 %v1339_v7, %v404_v39 }
  0xc0   : > { %963 = vpow2.f32 %v549_v38  ;;  %v540_v58 = vadd.f32 %v532_v48, %v465_v47  ;;  %v463_v60 = vadd.f32 %v455_v46, %v405_v51  ;;  %v1112_v61 = vmov 0  }
  0xc1   : > { %965 = vpow2.f32 %v555_v23  ;;  %954 = vset.pattern.permute.xlu0 %v1112_v61  ;;  %956 = vset.pattern.permute.xlu2 %v1112_v61  ;;  %v531_v56 = vmul.f32 %v1328_v57, %v475_v43  ;;  %v464_v62 = vadd.f32 %v456_v42, %v406_v52  ;;  %v476_v32 = vsel %vm474_vm2, %v471_v55, %v472_v37 }
  0xc2   : > { %v960_v59 = vpop.eup %959  ;;  %v477_v54 = vsel %vm474_vm2, %v470_v8, %v471_v55  ;;  %955 = vset.pattern.permute.xlu1 %v1112_v61  ;;  %v548_v63 = vsub.f32 0.0, %v540_v58  ;;  %v530_v15 = vmul.f32 %v1328_v57, %v476_v32 }
  0xc3   : > { %v566_v7 = vadd.f32 1.0, %v960_v59  ;;  %v529_v3 = vmul.f32 %v1328_v57, %v477_v54  ;;  %v539_v16 = vadd.f32 %v531_v56, %v464_v62 }
  0xc4   : > { %v563_v22 = vmul.f32 1.442695, %v548_v63  ;;  %v538_v27 = vadd.f32 %v530_v15, %v463_v60 }
  0xc5   : > { %v962_v17 = vpop.eup %961  ;;  %967 = vrcp.f32 %v566_v7  ;;  %v537_v26 = vadd.f32 %v529_v3, %v462_v24  ;;  %v547_v31 = vsub.f32 0.0, %v539_v16  ;;  %v597_v34 = vand.u32 2147483647, %v566_v7 }
  0xc6   : > { %v964_v29 = vpop.eup %963  ;;  %v1412_v28 = vadd.f32 1.0, %v962_v17  ;;  %969 = vpow2.f32 %v563_v22  ;;  %v546_v8 = vsub.f32 0.0, %v538_v27  ;;  %v599_v36 = vand.u32 2147483648, %v566_v7 }
  0xc7   : > { %v966_v50 = vpop.eup %965  ;;  %v545_v30 = vsub.f32 0.0, %v537_v26  ;;  %v1418_v37 = vadd.f32 1.0, %v964_v29  ;;  %v561_v39 = vmul.f32 1.442695, %v547_v31  ;;  %vm593_vm7 = vweird.f32 %v566_v7 }
  0xc8   : > { %v1414_v48 = vadd.f32 1.0, %v966_v50  ;;  %971 = vrcp.f32 %v1412_v28  ;;  %v559_v57 = vmul.f32 1.442695, %v546_v8  ;;  %vm1421_vm8 = vcmp.eq.f32.partialorder %v597_v34, 8.507059e+37 }
  0xc9   : > { %v557_v33 = vmul.f32 1.442695, %v545_v30  ;;  %v600_v35 = vor.u32 1.1754944e-38, %v599_v36  ;;  %vm608_vm10 = vweird.f32 %v1412_v28  ;;  %v612_v46 = vand.u32 2147483647, %v1412_v28 }
  0xca   : > { %973 = vrcp.f32 %v1414_v48  ;;  %v614_v51 = vand.u32 2147483648, %v1412_v28  ;;  %v627_v60 = vand.u32 2147483647, %v1414_v48  ;;  %v629_v54 = vand.u32 2147483648, %v1414_v48 }
  0xcb   : > { %v968_v49 = vpop.eup %967  ;;  %975 = vpow2.f32 %v557_v33  ;;  %vm613_vm15 = vcmp.eq.f32.partialorder %v612_v46, 8.507059e+37  ;;  %vm623_vm0 = vweird.f32 %v1414_v48  ;;  %v584_v36 = vand.u32 2147483648, %v1418_v37 }
  0xcc   : > { %977 = vpow2.f32 %v559_v57  ;;  %v589_v25 = vmul.f32 %v968_v49, %v566_v7  ;;  %v970_v38 = vpop.eup %969  ;;  %vm594_vm9 = vweird.f32 %v968_v49  ;;  %v615_v7 = vor.u32 1.1754944e-38, %v614_v51 }
  0xcd   : > { %979 = vrcp.f32 %v1418_v37  ;;  %v1426_v43 = vadd.f32 1.0, %v970_v38  ;;  %vm595_vm11 = vmor %vm593_vm7, %vm594_vm9  ;;  %v630_v50 = vor.u32 1.1754944e-38, %v629_v54  ;;  %vm628_vm2 = vcmp.eq.f32.partialorder %v627_v60, 8.507059e+37 }
  0xce   : > { %v972_v53 = vpop.eup %971  ;;  %v590_v40 = vsub.f32 1.0, %v589_v25  ;;  %981 = vpow2.f32 %v561_v39  ;;  %vm578_vm4 = vweird.f32 %v1418_v37  ;;  %v582_v39 = vand.u32 2147483647, %v1418_v37 }
  0xcf   : > { %v604_v42 = vmul.f32 %v972_v53, %v1412_v28  ;;  %983 = vrcp.f32 %v1426_v43  ;;  %vm609_vm12 = vweird.f32 %v972_v53 }
  0xd0   : > { %v974_v44 = vpop.eup %973  ;;  %v591_v45 = vmul.f32 %v968_v49, %v590_v40  ;;  %vm610_vm14 = vmor %vm608_vm10, %vm609_vm12  ;;  %vm583_vm7 = vcmp.eq.f32.partialorder %v582_v39, 8.507059e+37 }
  0xd1   : > { %v976_v23 = vpop.eup %975  ;;  %v605_v47 = vsub.f32 1.0, %v604_v42  ;;  %v619_v52 = vmul.f32 %v974_v44, %v1414_v48  ;;  %vm624_vm13 = vweird.f32 %v974_v44 }
  0xd2   : > { %v978_v55 = vpop.eup %977  ;;  %v1432_v24 = vadd.f32 1.0, %v976_v23  ;;  %v592_v58 = vadd.f32 %v968_v49, %v591_v45  ;;  %vm625_vm1 = vmor %vm623_vm0, %vm624_vm13  ;;  %v585_v45 = vor.u32 1.1754944e-38, %v584_v36 }
  0xd3   : > { %v1436_v61 = vadd.f32 1.0, %v978_v55  ;;  %v606_v59 = vmul.f32 %v972_v53, %v605_v47  ;;  %v620_v56 = vsub.f32 1.0, %v619_v52  ;;  %v980_v62 = vpop.eup %979 }
  0xd4   : > { %985 = vrcp.f32 %v1432_v24  ;;  %v596_v32 = vsel %vm595_vm11, %v968_v49, %v592_v58  ;;  %v574_v16 = vmul.f32 %v980_v62, %v1418_v37  ;;  %v982_v17 = vpop.eup %981  ;;  %vm579_vm3 = vweird.f32 %v980_v62 }
  0xd5   : > { %987 = vrcp.f32 %v1436_v61  ;;  %v601_v63 = vsel %vm1421_vm8, %v600_v35, %v596_v32  ;;  %v607_v3 = vadd.f32 %v972_v53, %v606_v59  ;;  %v621_v15 = vmul.f32 %v974_v44, %v620_v56  ;;  %v1448_v27 = vpop.eup %983  ;;  %vm580_vm5 = vmor %vm578_vm4, %vm579_vm3 }
  0xd6   : > { %700 = vperm.xlu0 %954, %v601_v63   ;;  %v575_v30 = vsub.f32 1.0, %v574_v16  ;;  %v679_v57 = vmul.f32 %v1448_v27, %v1426_v43  ;;  %v571_v38 = vadd.f32 1.0, %v982_v17  ;;  %v659_v42 = vand.u32 2147483648, %v1436_v61 }
  0xd7   : > { %v611_v22 = vsel %vm610_vm14, %v972_v53, %v607_v3  ;;  %v622_v26 = vadd.f32 %v974_v44, %v621_v15  ;;  %v657_v23 = vand.u32 2147483647, %v1436_v61  ;;  %vm653_vm8 = vweird.f32 %v1436_v61 }
  0xd8   : > { %v616_v29 = vsel %vm613_vm15, %v615_v7, %v611_v22  ;;  %v576_v33 = vmul.f32 %v980_v62, %v575_v30  ;;  %v680_v41 = vsub.f32 1.0, %v679_v57  ;;  %989 = vrcp.f32 %v571_v38 }
  0xd9   : > { %705 = vperm.xlu1 %955, %v616_v29   ;;  %v626_v8 = vsel %vm625_vm1, %v974_v44, %v622_v26  ;;  %v660_v52 = vor.u32 1.1754944e-38, %v659_v42  ;;  %vm658_vm11 = vcmp.eq.f32.partialorder %v657_v23, 8.507059e+37  ;;  %v644_v59 = vand.u32 2147483648, %v1432_v24 }
  0xda   : > { %v986_v28 = vpop.eup %985  ;;  %v631_v31 = vsel %vm628_vm2, %v630_v50, %v626_v8  ;;  %v577_v34 = vadd.f32 %v980_v62, %v576_v33  ;;  %v681_v37 = vmul.f32 %v1448_v27, %v680_v41  ;;  %vm638_vm12 = vweird.f32 %v1432_v24 }
  0xdb   : > { %v988_v49 = vpop.eup %987  ;;  %710 = vperm.xlu2 %956, %v631_v31   ;;  %v634_v48 = vmul.f32 %v986_v28, %v1432_v24  ;;  %vm639_vm10 = vweird.f32 %v986_v28  ;;  %vm684_vm14 = vweird.f32 %v1448_v27  ;;  %v689_v63 = vand.u32 2147483648, %v1426_v43 }
  0xdc   : > { %v649_v25 = vmul.f32 %v988_v49, %v1436_v61  ;;  %v581_v35 = vsel %vm580_vm5, %v980_v62, %v577_v34  ;;  %vm654_vm6 = vweird.f32 %v988_v49  ;;  %v642_v62 = vand.u32 2147483647, %v1432_v24  ;;  %vm640_vm13 = vmor %vm638_vm12, %vm639_vm10 }
  0xdd   : > { %v635_v53 = vsub.f32 1.0, %v634_v48  ;;  %v586_v47 = vsel %vm583_vm7, %v585_v45, %v581_v35  ;;  %vm655_vm9 = vmor %vm653_vm8, %vm654_vm6  ;;  %v682_v61 = vadd.f32 %v1448_v27, %v681_v37  ;;  %v645_v15 = vor.u32 1.1754944e-38, %v644_v59 }
  0xde   : > { %v650_v40 = vsub.f32 1.0, %v649_v25  ;;  %v990_v58 = vpop.eup %989  ;;  %vm683_vm15 = vweird.f32 %v1426_v43  ;;  %v687_v7 = vand.u32 2147483647, %v1426_v43  ;;  %vm643_vm0 = vcmp.eq.f32.partialorder %v642_v62, 8.507059e+37 }
  0xdf   : > { %v636_v44 = vmul.f32 %v986_v28, %v635_v53  ;;  %v664_v32 = vmul.f32 %v990_v58, %v571_v38  ;;  %vm685_vm1 = vmor %vm683_vm15, %vm684_vm14  ;;  %v690_v22 = vor.u32 1.1754944e-38, %v689_v63  ;;  %vm669_vm2 = vweird.f32 %v990_v58 }
  0xe0   : > { %v651_v46 = vmul.f32 %v988_v49, %v650_v40  ;;  %v686_v17 = vsel %vm685_vm1, %v1448_v27, %v682_v61  ;;  %vm688_vm3 = vcmp.eq.f32.partialorder %v687_v7, 8.507059e+37  ;;  %v674_v29 = vand.u32 2147483648, %v571_v38 }
  0xe1   : > { %v637_v55 = vadd.f32 %v986_v28, %v636_v44  ;;  %v665_v3 = vsub.f32 1.0, %v664_v32  ;;  %v691_v50 = vsel %vm688_vm3, %v690_v22, %v686_v17  ;;  %vm668_vm4 = vweird.f32 %v571_v38 }
  0xe2   : > { %v652_v51 = vadd.f32 %v988_v49, %v651_v46  ;;  %v672_v30 = vand.u32 2147483647, %v571_v38  ;;  %vm670_vm5 = vmor %vm668_vm4, %vm669_vm2  ;;  %v675_v43 = vor.u32 1.1754944e-38, %v674_v29 }
  0xe3   : > { %695 = vperm.xlu2 %956, %v586_v47   ;;  %v641_v54 = vsel %vm640_vm13, %v986_v28, %v637_v55  ;;  %v666_v16 = vmul.f32 %v990_v58, %v665_v3 }
  0xe4   : > { %v656_v60 = vsel %vm655_vm9, %v988_v49, %v652_v51  ;;  %v646_v24 = vsel %vm643_vm0, %v645_v15, %v641_v54  ;;  %vm673_vm6 = vcmp.eq.f32.partialorder %v672_v30, 8.507059e+37 }
  0xe5   : > { %v661_v56 = vsel %vm658_vm11, %v660_v52, %v656_v60  ;;  %v667_v26 = vadd.f32 %v990_v58, %v666_v16 }
  0xe6   : > { %720 = vperm.xlu1 %955, %v661_v56  }
  0xe7   : > { %v671_v8 = vsel %vm670_vm5, %v990_v58, %v667_v26 }
  0xe8   : > { %v676_v28 = vsel %vm673_vm6, %v675_v43, %v671_v8 }
  0xeb   : > { %715 = vperm.xlu2 %956, %v646_v24  }
  0xee   : > { %730 = vperm.xlu1 %955, %v691_v50  }
  0xf3   : > { %725 = vperm.xlu2 %956, %v676_v28  }
 0x135   : > { %v711_v31 = vpop.permute.xlu2 %710 }
 0x136   : > { %v739_v27 = vmul.f32 %v711_v31, %v1280_v13  ;;  %v740_v33 = vmul.f32 %v711_v31, %v1283_v14 }
 0x138   : > { %755 = vst [vmem:[%s1475_s5 + $0x30] sm:$0xff] %v739_v27 }
 0x139   : > { %756 = vst [vmem:[%s1475_s5 + $0x38] sm:$0xff] %v740_v33 }
 0x13d   : > { %v696_v57 = vpop.permute.xlu2 %695 }
 0x13e   : > { %v733_v49 = vmul.f32 %v696_v57, %v1258_v5  ;;  %v734_v13 = vmul.f32 %v696_v57, %v1261_v6 }
 0x140   : > { %749 = vst [vmem:[%s1475_s5] sm:$0xff] %v733_v49 }
 0x141   : > { %750 = vst [vmem:[%s1475_s5 + $0x8] sm:$0xff] %v734_v13 }
 0x145   : > { %v716_v14 = vpop.permute.xlu2 %715 }
 0x146   : > { %v741_v48 = vmul.f32 %v716_v14, %v1244_v0  ;;  %v742_v34 = vmul.f32 %v716_v14, %v1247_v1 }
 0x148   : > { %757 = vst [vmem:[%s1475_s5 + $0x40] sm:$0xff] %v741_v48  ;;  %v701_v36 = vpop.permute.xlu0 %700 }
 0x149   : > { %758 = vst [vmem:[%s1475_s5 + $0x48] sm:$0xff] %v742_v34  ;;  %v735_v25 = vmul.f32 %v701_v36, %v1250_v2  ;;  %v736_v5 = vmul.f32 %v701_v36, %v1255_v4 }
 0x14b   : > { %751 = vst [vmem:[%s1475_s5 + $0x10] sm:$0xff] %v735_v25  ;;  %v706_v6 = vpop.permute.xlu1 %705 }
 0x14c   : > { %752 = vst [vmem:[%s1475_s5 + $0x18] sm:$0xff] %v736_v5  ;;  %v737_v0 = vmul.f32 %v706_v6, %v1274_v11  ;;  %v738_v1 = vmul.f32 %v706_v6, %v1277_v12 }
 0x14d   : > { %v726_v38 = vpop.permute.xlu2 %725 }
 0x14e   : > { %753 = vst [vmem:[%s1475_s5 + $0x20] sm:$0xff] %v737_v0  ;;  %v745_v39 = vmul.f32 %v726_v38, %v1292_v18  ;;  %v746_v53 = vmul.f32 %v726_v38, %v1295_v19 }
 0x14f   : > { %754 = vst [vmem:[%s1475_s5 + $0x28] sm:$0xff] %v738_v1 }
 0x150   : > { %761 = vst [vmem:[%s1475_s5 + $0x60] sm:$0xff] %v745_v39 }
 0x151   : > { %762 = vst [vmem:[%s1475_s5 + $0x68] sm:$0xff] %v746_v53 }
 0x158   : > { %v721_v2 = vpop.permute.xlu1 %720 }
 0x159   : > { %v743_v4 = vmul.f32 %v721_v2, %v1298_v20  ;;  %v744_v11 = vmul.f32 %v721_v2, %v1301_v21 }
 0x15b   : > { %759 = vst [vmem:[%s1475_s5 + $0x50] sm:$0xff] %v743_v4 }
 0x15c   : > { %760 = vst [vmem:[%s1475_s5 + $0x58] sm:$0xff] %v744_v11 }
 0x160   : > { %v731_v12 = vpop.permute.xlu1 %730 }
 0x161   : > { %v747_v18 = vmul.f32 %v731_v12, %v1268_v9  ;;  %v748_v19 = vmul.f32 %v731_v12, %v1271_v10 }
 0x163   : > { %763 = vst [vmem:[%s1475_s5 + $0x70] sm:$0xff] %v747_v18 }
 0x164   : > { %764 = vst [vmem:[%s1475_s5 + $0x78] sm:$0xff] %v748_v19 }
 0x165   : > { %1063 = shalt.err (!%p1060_p8)
}
 0x166   : > { %s1113_s4 = smov 256   ;;  %s1114_s8 = smov 16  }
 0x167   : > { %897 = dma.vmem_to_hbm [thread:$0]  (%p1182_p11), %s780_s24, 2048, %s782_s25, %s766_s13, %s1113_s4, %s1113_s4, %s1114_s8  }
 0x168 PF: > { %s796_s20 = sand.u32 1, %s1094_s9   ;;  %p1552_p9 = scmp.ge.s32.totalorder %s1106_s12, 2 }
 0x169   : > { %s797_s23 = scalar_lea.sflag [#allocation4], %s796_s20 }
 0x16a   : > { %p908_p10 = pnand %p1552_p9, %p1186_p12 }
 0x16c   : > { %p909_p1 = pneg %p908_p10 }
 0x16e   : > { %1089 = dma.done.wait (%p909_p1), %s797_s23, 2048  }
 0x16f   : > { %1091 = vsyncadd (%p909_p1), %s797_s23, 4294965248  ;;  %p16_p2 = scmp.ge.s32.totalorder %s1155_s15, 4   ;;  %s1553_s9 = smov %s1098_s10 }
 0x170   : > { %s1554_s10 = smov %s1102_s11  ;;  %s1555_s11 = smov %s1167_s18 }
 0x171   : > { %s1556_s12 = smov %s1155_s15  ;;  %18 = sbr.rel (!%p16_p2) target bundleno = 6 (0x6), region = 78 }
 0x176   :  { %803 = vsyncpa [#allocation3], 1 }
 0x177   :  { %805 = vsyncpa [#allocation3 + $0x1], 1 }
 0x178   :  { %806 = vsyncpa [#allocation4], 1 }
 0x179   :  { %808 = vsyncpa [#allocation4 + $0x1], 1 }
 0x17a   :  { %809 = vsyncpa [#allocation5], 1 }
 0x17b   :  { %811 = vsyncpa [#allocation5 + $0x1], 1 }

</bundles_post_ra>
